<compile_context>
chip_gen: v6e
topology: v6e:2x2x1
jax: 0.10.0
libtpu: 0.0.40
codegen_flags: <defaults>
</compile_context>

<pallas_src>
import functools

import jax
import jax.numpy as jnp
from jax.experimental import pallas as pl
from jax.experimental.pallas import tpu as pltpu


def _round_up(n, m):
    return ((n + m - 1) // m) * m


# ----------------------------------------------------------------------------
# Kernel: one batch tile per grid step; weight slabs resident across the grid.
# ----------------------------------------------------------------------------
def _concat_teacher_kernel(x_ref, wf_ref, bf_ref, wh_ref, bh_ref,
                           was_ref, bas_ref, wnx2_ref, out_ref, *,
                           compute_dtype, d_old_p):
    x = x_ref[...]                                           # (TB, d_in), bf16

    # front: z = relu(x @ Wf + bf)          (f32 accumulate, f32 bias)
    z = jnp.maximum(
        jnp.dot(x, wf_ref[...], preferred_element_type=jnp.float32)
        + bf_ref[...], 0.0)

    # fused head: h[:, :d_old] = y1 = z@Wold + b_old
    #             h[:, d_old:d_out] = z@Wnx + b_new ;  h[:, d_out:] = 0
    h = (jnp.dot(z.astype(compute_dtype), wh_ref[...],
                 preferred_element_type=jnp.float32) + bh_ref[...])

    # assist: x2 = relu(y1 @ Was + bas).  Only the first d_old_p (128-aligned)
    # lanes of h are fed to the MXU; Was rows beyond d_old are zero, so the
    # y2 columns that fall inside that slice contribute nothing.
    # (Intentional precision note: y1 is cast to compute_dtype here; the f32
    #  reference computes assist from f32 y1.)
    h_old = h[:, :d_old_p]
    x2 = jnp.maximum(
        jnp.dot(h_old.astype(compute_dtype), was_ref[...],
                preferred_element_type=jnp.float32) + bas_ref[...], 0.0)

    # out = h + x2 @ Wnx2_pad (Wnx2 columns below d_old are zero, so this adds
    # only into the y2 columns) -> single contiguous lane-dense slab store.
    out_ref[...] = (h + jnp.dot(x2.astype(compute_dtype), wnx2_ref[...],
                                preferred_element_type=jnp.float32)
                    ).astype(out_ref.dtype)


# ----------------------------------------------------------------------------
# One-time parameter fusing + padding (hoisted out of the per-call path).
# ----------------------------------------------------------------------------
def prepare_params(params, compute_dtype=jnp.bfloat16):
    """Fuse and 128-pad raw parameters.  Call ONCE, reuse the result."""
    w_f, b_f, w_old, b_old, w_as, b_as, w_nx, w_nx2, b_new = params
    d_in, d_feat = w_f.shape
    d_old = w_old.shape[1]
    d_assist = w_as.shape[1]
    d_new = w_nx.shape[1]
    d_out = d_old + d_new

    d_feat_p = _round_up(d_feat, 128)
    d_old_p = _round_up(d_old, 128)
    d_as_p = _round_up(d_assist, 128)
    d_out_p = _round_up(d_out, 128)

    cdt = compute_dtype
    # x keeps its true d_in lanes, so Wf rows stay at d_in (no zero rows).
    wf_p = (jnp.zeros((d_in, d_feat_p), cdt)
            .at[:, :d_feat].set(w_f.astype(cdt)))
    bf_p = jnp.zeros((1, d_feat_p), jnp.float32).at[:, :d_feat].set(b_f)

    # Fused head weight: cols [0,d_old)=Wold, [d_old,d_out)=Wnx, rest zero.
    wh_p = (jnp.zeros((d_feat_p, d_out_p), cdt)
            .at[:d_feat, :d_old].set(w_old.astype(cdt))
            .at[:d_feat, d_old:d_out].set(w_nx.astype(cdt)))
    bh_p = (jnp.zeros((1, d_out_p), jnp.float32)
            .at[:, :d_old].set(b_old)
            .at[:, d_old:d_out].set(b_new))

    # Assist weight K dim trimmed to d_old_p (not d_out_p); zero rows >= d_old.
    was_p = (jnp.zeros((d_old_p, d_as_p), cdt)
             .at[:d_old, :d_assist].set(w_as.astype(cdt)))
    bas_p = jnp.zeros((1, d_as_p), jnp.float32).at[:, :d_assist].set(b_as)

    # Wnx2 padded into the output slab layout; zero columns below d_old.
    wnx2_p = (jnp.zeros((d_as_p, d_out_p), cdt)
              .at[:d_assist, d_old:d_out].set(w_nx2.astype(cdt)))

    fused = (wf_p, bf_p, wh_p, bh_p, was_p, bas_p, wnx2_p)
    dims = dict(d_in=d_in, d_old=d_old, d_old_p=d_old_p,
                d_out=d_out, d_out_p=d_out_p)
    return fused, dims


# ----------------------------------------------------------------------------
# Wrapper
# ----------------------------------------------------------------------------
def concat_teacher_forward(x, prepared, *, tile_b=None,
                           out_dtype=jnp.float32, return_padded=False):
    """Fused forward of ConcatTeacherModel.

    prepared:      result of prepare_params(params[, compute_dtype]).
    tile_b:        batch tile; default splits the batch into >= 2 tiles
                   (v7x megacore) capped at 512.
    out_dtype:     output dtype (use jnp.bfloat16 to halve output HBM traffic
                   if downstream tolerates it).
    return_padded: return the (b_pad, d_out_p) slab directly and skip the
                   post-kernel slice pass (consumer must accept the padding).
    """
    fused, dims = prepared
    compute_dtype = fused[0].dtype
    B, d_in = x.shape
    assert d_in == dims["d_in"], "input feature dim mismatch"
    d_out, d_out_p, d_old_p = dims["d_out"], dims["d_out_p"], dims["d_old_p"]

    if tile_b is None:
        if B >= 16:
            # >= 2 batch tiles so ("parallel",) can shard across both v7x TCs;
            # cap at 512 (bigger tiles amortize the ~0.35us/step overhead and
            # get closer to the HBM roofline than 256-wide tiles).
            tile_b = min(_round_up(pl.cdiv(B, 2), 8), 512)
        else:
            tile_b = _round_up(max(B, 8), 8)
    b_pad = _round_up(B, tile_b)

    # No lane padding of x; cast to compute_dtype and pad batch only if needed.
    x_c = x if x.dtype == compute_dtype else x.astype(compute_dtype)
    if b_pad != B:
        x_c = jnp.pad(x_c, ((0, b_pad - B), (0, 0)))

    # Grid-constant weight/bias slabs: fetched once, resident across the grid.
    # NOTE(v7x at scale): add pipeline_mode=pl.Buffered(1) here and/or stream
    # weight tiles over a reduction axis once weights approach the 64 MiB VMEM.
    full = lambda arr: pl.BlockSpec(arr.shape, lambda i: (0, 0))

    kernel = functools.partial(_concat_teacher_kernel,
                               compute_dtype=compute_dtype,
                               d_old_p=d_old_p)

    out_p = pl.pallas_call(
        kernel,
        out_shape=jax.ShapeDtypeStruct((b_pad, d_out_p), out_dtype),
        grid_spec=pltpu.PrefetchScalarGridSpec(
            num_scalar_prefetch=0,
            grid=(b_pad // tile_b,),
            in_specs=[pl.BlockSpec((tile_b, d_in), lambda i: (i, 0))]
                     + [full(a) for a in fused],
            out_specs=pl.BlockSpec((tile_b, d_out_p), lambda i: (i, 0)),
        ),
        compiler_params=pltpu.CompilerParams(
            dimension_semantics=("parallel",)),
    )(x_c, *fused)

    if return_padded:
        return out_p
    return out_p[:B, :d_out]


# ----------------------------------------------------------------------------
# Parameter init + pure-JAX reference
# ----------------------------------------------------------------------------
def init_params(key, d_in, d_feat, d_old, d_assist, d_new):
    ks = jax.random.split(key, 9)

    def lin(k, fan_in, fan_out):
        bound = 1.0 / jnp.sqrt(fan_in)
        return jax.random.uniform(k, (fan_in, fan_out), jnp.float32,
                                  -bound, bound)

    w_f = lin(ks[0], d_in, d_feat)
    b_f = jax.random.uniform(ks[1], (1, d_feat), jnp.float32, -0.1, 0.1)
    w_old = lin(ks[2], d_feat, d_old)
    b_old = jax.random.uniform(ks[3], (1, d_old), jnp.float32, -0.1, 0.1)
    w_as = lin(ks[4], d_old, d_assist)
    b_as = jax.random.uniform(ks[5], (1, d_assist), jnp.float32, -0.1, 0.1)
    w_nx = lin(ks[6], d_feat, d_new)
    w_nx2 = lin(ks[7], d_assist, d_new)
    b_new = jax.random.uniform(ks[8], (1, d_new), jnp.float32, -0.1, 0.1)
    return (w_f, b_f, w_old, b_old, w_as, b_as, w_nx, w_nx2, b_new)


def reference_forward(x, params):
    w_f, b_f, w_old, b_old, w_as, b_as, w_nx, w_nx2, b_new = params
    hp = jax.lax.Precision.HIGHEST
    z = jnp.maximum(jnp.dot(x, w_f, precision=hp) + b_f, 0.0)
    y1 = jnp.dot(z, w_old, precision=hp) + b_old
    x2 = jnp.maximum(jnp.dot(y1, w_as, precision=hp) + b_as, 0.0)
    y2 = (jnp.dot(z, w_nx, precision=hp)
          + jnp.dot(x2, w_nx2, precision=hp) + b_new)
    return jnp.concatenate([y1, y2], axis=1)


if __name__ == "__main__":
    key = jax.random.PRNGKey(0)
    k_x, k_p = jax.random.split(key)

    B, D_IN, D_FEAT, D_OLD, D_ASSIST, D_NEW = 16, 32, 64, 48, 24, 40
    x = jax.random.normal(k_x, (B, D_IN), jnp.float32)
    params = init_params(k_p, D_IN, D_FEAT, D_OLD, D_ASSIST, D_NEW)

    y_ref = reference_forward(x, params)

    # Default path: bf16 MXU operands, f32 accumulation, 2 batch tiles (so the
    # batch axis can shard across both v7x TensorCores).
    prepared_bf16 = prepare_params(params)                    # bf16 default
    y = concat_teacher_forward(x, prepared_bf16)
    jax.block_until_ready(y)
    assert y.shape == (B, D_OLD + D_NEW)
    assert jnp.allclose(y, y_ref, atol=5e-2, rtol=5e-2), float(
        jnp.max(jnp.abs(y - y_ref)))

    # f32-operand path (tighter accuracy check of the fused-slab algebra).
    prepared_f32 = prepare_params(params, compute_dtype=jnp.float32)
    y32 = concat_teacher_forward(x, prepared_f32)
    jax.block_until_ready(y32)
    assert jnp.allclose(y32, y_ref, atol=1e-4, rtol=1e-4), float(
        jnp.max(jnp.abs(y32 - y_ref)))

    # Ragged batch exercising the (minimal) batch-padding path.
    y_ragged = concat_teacher_forward(x[:13], prepared_f32)
    jax.block_until_ready(y_ragged)
    assert jnp.allclose(y_ragged, y_ref[:13], atol=1e-4, rtol=1e-4)

    print("KERNEL_OK")
</pallas_src>

<mosaic_0001>
module attributes {stable_mosaic.version = 11 : i64} {
  func.func @_concat_teacher_kernel(%arg0: i32, %arg1: memref<8x32xbf16, #tpu.memory_space<vmem>>, %arg2: memref<32x128xbf16, #tpu.memory_space<vmem>>, %arg3: memref<1x128xf32, #tpu.memory_space<vmem>>, %arg4: memref<128x128xbf16, #tpu.memory_space<vmem>>, %arg5: memref<1x128xf32, #tpu.memory_space<vmem>>, %arg6: memref<128x128xbf16, #tpu.memory_space<vmem>>, %arg7: memref<1x128xf32, #tpu.memory_space<vmem>>, %arg8: memref<128x128xbf16, #tpu.memory_space<vmem>>, %arg9: memref<8x128xf32, #tpu.memory_space<vmem>>) attributes {dimension_semantics = [#tpu.dimension_semantics<parallel>], iteration_bounds = array<i64: 2>, scalar_prefetch = 0 : i64, scratch_operands = 0 : i64, tpu.core_type = #tpu.core_type<tc>, window_params = [{transform_indices = @transform_0, window_bounds = array<i64: 8, 32>}, {pipeline_mode = #tpu.pipeline_mode<synchronous>, transform_indices = @transform_1, window_bounds = array<i64: 32, 128>}, {pipeline_mode = #tpu.pipeline_mode<synchronous>, transform_indices = @transform_2, window_bounds = array<i64: 1, 128>}, {pipeline_mode = #tpu.pipeline_mode<synchronous>, transform_indices = @transform_3, window_bounds = array<i64: 128, 128>}, {pipeline_mode = #tpu.pipeline_mode<synchronous>, transform_indices = @transform_4, window_bounds = array<i64: 1, 128>}, {pipeline_mode = #tpu.pipeline_mode<synchronous>, transform_indices = @transform_5, window_bounds = array<i64: 128, 128>}, {pipeline_mode = #tpu.pipeline_mode<synchronous>, transform_indices = @transform_6, window_bounds = array<i64: 1, 128>}, {pipeline_mode = #tpu.pipeline_mode<synchronous>, transform_indices = @transform_7, window_bounds = array<i64: 128, 128>}, {transform_indices = @transform_8, window_bounds = array<i64: 8, 128>}]} {
    %c0 = arith.constant 0 : index
    %c0_0 = arith.constant 0 : index
    %0 = vector.load %arg1[%c0, %c0_0] : memref<8x32xbf16, #tpu.memory_space<vmem>>, vector<8x32xbf16>
    %c0_1 = arith.constant 0 : index
    %c0_2 = arith.constant 0 : index
    %1 = vector.load %arg2[%c0_1, %c0_2] : memref<32x128xbf16, #tpu.memory_space<vmem>>, vector<32x128xbf16>
    %cst = arith.constant dense<0.000000e+00> : vector<8x128xf32>
    %2 = tpu.matmul %0, %1, %cst {dimension_numbers = #tpu.dot_dimension_numbers<[1], [0], [0], [1], [0, 0, 1, 1], [], []>} : vector<8x32xbf16>, vector<32x128xbf16>, vector<8x128xf32> -> vector<8x128xf32>
    %c0_3 = arith.constant 0 : index
    %c0_4 = arith.constant 0 : index
    %3 = vector.load %arg3[%c0_3, %c0_4] : memref<1x128xf32, #tpu.memory_space<vmem>>, vector<1x128xf32>
    %4 = vector.broadcast %3 : vector<1x128xf32> to vector<8x128xf32>
    %5 = arith.addf %2, %4 : vector<8x128xf32>
    %cst_5 = arith.constant 0.000000e+00 : f32
    %6 = vector.broadcast %cst_5 : f32 to vector<8x128xf32>
    %7 = arith.maximumf %5, %6 : vector<8x128xf32>
    %8 = arith.truncf %7 : vector<8x128xf32> to vector<8x128xbf16>
    %c0_6 = arith.constant 0 : index
    %c0_7 = arith.constant 0 : index
    %9 = vector.load %arg4[%c0_6, %c0_7] : memref<128x128xbf16, #tpu.memory_space<vmem>>, vector<128x128xbf16>
    %cst_8 = arith.constant dense<0.000000e+00> : vector<8x128xf32>
    %10 = tpu.matmul %8, %9, %cst_8 {dimension_numbers = #tpu.dot_dimension_numbers<[1], [0], [0], [1], [0, 0, 1, 1], [], []>} : vector<8x128xbf16>, vector<128x128xbf16>, vector<8x128xf32> -> vector<8x128xf32>
    %c0_9 = arith.constant 0 : index
    %c0_10 = arith.constant 0 : index
    %11 = vector.load %arg5[%c0_9, %c0_10] : memref<1x128xf32, #tpu.memory_space<vmem>>, vector<1x128xf32>
    %12 = vector.broadcast %11 : vector<1x128xf32> to vector<8x128xf32>
    %13 = arith.addf %10, %12 : vector<8x128xf32>
    %14 = arith.truncf %13 : vector<8x128xf32> to vector<8x128xbf16>
    %c0_11 = arith.constant 0 : index
    %c0_12 = arith.constant 0 : index
    %15 = vector.load %arg6[%c0_11, %c0_12] : memref<128x128xbf16, #tpu.memory_space<vmem>>, vector<128x128xbf16>
    %cst_13 = arith.constant dense<0.000000e+00> : vector<8x128xf32>
    %16 = tpu.matmul %14, %15, %cst_13 {dimension_numbers = #tpu.dot_dimension_numbers<[1], [0], [0], [1], [0, 0, 1, 1], [], []>} : vector<8x128xbf16>, vector<128x128xbf16>, vector<8x128xf32> -> vector<8x128xf32>
    %c0_14 = arith.constant 0 : index
    %c0_15 = arith.constant 0 : index
    %17 = vector.load %arg7[%c0_14, %c0_15] : memref<1x128xf32, #tpu.memory_space<vmem>>, vector<1x128xf32>
    %18 = vector.broadcast %17 : vector<1x128xf32> to vector<8x128xf32>
    %19 = arith.addf %16, %18 : vector<8x128xf32>
    %cst_16 = arith.constant 0.000000e+00 : f32
    %20 = vector.broadcast %cst_16 : f32 to vector<8x128xf32>
    %21 = arith.maximumf %19, %20 : vector<8x128xf32>
    %22 = arith.truncf %21 : vector<8x128xf32> to vector<8x128xbf16>
    %c0_17 = arith.constant 0 : index
    %c0_18 = arith.constant 0 : index
    %23 = vector.load %arg8[%c0_17, %c0_18] : memref<128x128xbf16, #tpu.memory_space<vmem>>, vector<128x128xbf16>
    %cst_19 = arith.constant dense<0.000000e+00> : vector<8x128xf32>
    %24 = tpu.matmul %22, %23, %cst_19 {dimension_numbers = #tpu.dot_dimension_numbers<[1], [0], [0], [1], [0, 0, 1, 1], [], []>} : vector<8x128xbf16>, vector<128x128xbf16>, vector<8x128xf32> -> vector<8x128xf32>
    %25 = arith.addf %13, %24 : vector<8x128xf32>
    %c0_20 = arith.constant 0 : index
    %c0_21 = arith.constant 0 : index
    %26 = vector.load %arg9[%c0_20, %c0_21] : memref<8x128xf32, #tpu.memory_space<vmem>>, vector<8x128xf32>
    tpu.vector_store %arg9[%c0_20, %c0_21], %25 {strides = array<i32>} : memref<8x128xf32, #tpu.memory_space<vmem>>, vector<8x128xf32>,
    return
  }
  func.func @transform_0(%arg0: i32) -> (i32, i32) {
    %c0_i32 = arith.constant 0 : i32
    %c0_i32_0 = arith.constant 0 : i32
    return %arg0, %c0_i32 : i32, i32
  }
  func.func @transform_1(%arg0: i32) -> (i32, i32) {
    %c0_i32 = arith.constant 0 : i32
    %c0_i32_0 = arith.constant 0 : i32
    %c0_i32_1 = arith.constant 0 : i32
    return %c0_i32, %c0_i32_0 : i32, i32
  }
  func.func @transform_2(%arg0: i32) -> (i32, i32) {
    %c0_i32 = arith.constant 0 : i32
    %c0_i32_0 = arith.constant 0 : i32
    %c0_i32_1 = arith.constant 0 : i32
    return %c0_i32, %c0_i32_0 : i32, i32
  }
  func.func @transform_3(%arg0: i32) -> (i32, i32) {
    %c0_i32 = arith.constant 0 : i32
    %c0_i32_0 = arith.constant 0 : i32
    %c0_i32_1 = arith.constant 0 : i32
    return %c0_i32, %c0_i32_0 : i32, i32
  }
  func.func @transform_4(%arg0: i32) -> (i32, i32) {
    %c0_i32 = arith.constant 0 : i32
    %c0_i32_0 = arith.constant 0 : i32
    %c0_i32_1 = arith.constant 0 : i32
    return %c0_i32, %c0_i32_0 : i32, i32
  }
  func.func @transform_5(%arg0: i32) -> (i32, i32) {
    %c0_i32 = arith.constant 0 : i32
    %c0_i32_0 = arith.constant 0 : i32
    %c0_i32_1 = arith.constant 0 : i32
    return %c0_i32, %c0_i32_0 : i32, i32
  }
  func.func @transform_6(%arg0: i32) -> (i32, i32) {
    %c0_i32 = arith.constant 0 : i32
    %c0_i32_0 = arith.constant 0 : i32
    %c0_i32_1 = arith.constant 0 : i32
    return %c0_i32, %c0_i32_0 : i32, i32
  }
  func.func @transform_7(%arg0: i32) -> (i32, i32) {
    %c0_i32 = arith.constant 0 : i32
    %c0_i32_0 = arith.constant 0 : i32
    %c0_i32_1 = arith.constant 0 : i32
    return %c0_i32, %c0_i32_0 : i32, i32
  }
  func.func @transform_8(%arg0: i32) -> (i32, i32) {
    %c0_i32 = arith.constant 0 : i32
    %c0_i32_0 = arith.constant 0 : i32
    return %arg0, %c0_i32 : i32, i32
  }
}

</mosaic_0001>

<bundles_post_ra>
// kernel: tpu_custom_call.1
= control target key start
LH: loop header
LB: loop body
LE: loop exit
PB: predicated region body
PF: predicated region fallthrough
CT: control target
= control target key end

     0   :  { %s1700_s0 = inlined_call_operand.hbm [shape: bf16[16,32], index: 0, kind: input, shape index: {}]   ;;  %s1701_s1 = inlined_call_operand.hbm [shape: bf16[32,128], index: 1, kind: input, shape index: {}]   ;;  %s1702_s2 = inlined_call_operand.vmem [shape: f32[1,128], index: 2, kind: input, shape index: {}]   ;;  %s1703_s3 = inlined_call_operand.hbm [shape: bf16[128,128], index: 3, kind: input, shape index: {}]   ;;  %s1704_s4 = inlined_call_operand.vmem [shape: f32[1,128], index: 4, kind: input, shape index: {}]   ;;  %s1705_s5 = inlined_call_operand.hbm [shape: bf16[128,128], index: 5, kind: input, shape index: {}]   ;;  %s1706_s6 = inlined_call_operand.vmem [shape: f32[1,128], index: 6, kind: input, shape index: {}]   ;;  %s1707_s7 = inlined_call_operand.hbm [shape: bf16[128,128], index: 7, kind: input, shape index: {}]   ;;  %s1708_s8 = inlined_call_operand.hbm [shape: f32[16,128], index: 8, kind: output, shape index: {}]  }
   0x1   :  { %1713 = sst [smem:[#allocation16_spill]] %s1701_s1 }
   0x2   :  { %1714 = sst [smem:[#allocation17_spill]] %s1703_s3 }
   0x3   :  { %1715 = sst [smem:[#allocation18_spill]] %s1705_s5 }
   0x4   :  { %13 = vsyncpa [#allocation3], 0 }
   0x5   :  { %15 = vsyncpa [#allocation3 + $0x1], 0 }
   0x6   :  { %16 = vsyncpa [#allocation6], 0 }
   0x7   :  { %17 = vsyncpa [#allocation9], 0 }
   0x8   :  { %18 = vsyncpa [#allocation4], 0 }
   0x9   :  { %20 = vsyncpa [#allocation4 + $0x1], 0  ;;  %s1429_s27 = smov 0   ;;  %s1431_s28 = smov 0  }
   0xa   :  { %s1433_s29 = smov 0   ;;  %s1435_s30 = smov 0  }
   0xb LB: > { %s1374_s9 = smov [#allocation5]   ;;  %s1450_s11 = sadd.s32 4294967295, %s1372_s30   ;;  %s1372_s30 = sphi %s1435_s30, %s1738_s30   ;;  %s1368_s29 = sphi %s1433_s29, %s1737_s29   ;;  %s1364_s28 = sphi %s1431_s28, %s1736_s28   ;;  %s1360_s27 = sphi %s1429_s27, %s1735_s27  }
   0xc   : > { %s242_s10 = sshll.u32 %s1374_s9, 4  ;;  %p904_p0 = scmp.ge.s32.totalorder %s1372_s30, 1  ;;  %s243_s10 = int_to_ptr.vmem [resolvable:$true] %s242_s10 }
   0xd   : > { %p1709_p1 = scmp.eq.s32.totalorder %s1450_s11, 0  ;;  %p230_p2 = scmp.lt.s32.totalorder %s1372_s30, 3 }
   0xe   : > { %s1375_s13 = smov [#allocation8]   ;;  %s1376_s16 = smov [#allocation7]  }
   0xf   : > { %p1455_p3 = pnand %p904_p0, %p230_p2  ;;  %s274_s14 = sshll.u32 %s1375_s13, 4  ;;  %s1468_s14 = int_to_ptr.vmem [resolvable:$true] %s274_s14 }
  0x10   : > { %s258_s17 = sshll.u32 %s1376_s16, 4  ;;  %s1179_s18 = scalar_lea.vmem %s243_s10, 256  ;;  %s1470_s17 = int_to_ptr.vmem [resolvable:$true] %s258_s17 }
  0x11   : > { %s1716_s12 = scalar_select %p1455_p3, 1, 0 }
  0x12   : > { %p1071_p5 = pneg %p1455_p3  ;;  %p1180_p8 = scmp.ne.s32.totalorder %s243_s10, %s1179_s18 }
  0x13   : > { %p1187_p11 = scmp.lt.s32.totalorder %s243_s10, %s243_s10  ;;  %p1188_p12 = scmp.lt.s32.totalorder %s1179_s18, %s1179_s18 }
  0x14   : > { %p1464_p6 = pnand %p1071_p5, %p1709_p1 }
  0x15   : > { %p1189_p13 = por %p1188_p12, %p1187_p11 }
  0x16   : > { %p1170_p7 = pneg %p1464_p6 }
  0x18   : > { %p1182_p9 = pnand %p1180_p8, %p1170_p7 }
  0x1a   : > { %p1183_p10 = pneg %p1182_p9 }
  0x1c   : > { %p1190_p0 = pnand %p1189_p13, %p1183_p10 }
  0x1e   : > { %1193 = shalt.err (!%p1190_p0)
}
  0x1f   : > { %s1377_s19 = smov 64   ;;  %s1378_s20 = smov 4  }
  0x20   : > { %s1718_s1 = sld [smem:[#allocation16_spill]]  ;;  %s1205_s23 = scalar_lea.vmem %s1468_s14, 1024 }
  0x21   : > { %p1206_p2 = scmp.ne.s32.totalorder %s1468_s14, %s1205_s23  ;;  %p1213_p9 = scmp.lt.s32.totalorder %s1468_s14, %s1468_s14 }
  0x22   : > { %p1214_p10 = scmp.lt.s32.totalorder %s1205_s23, %s1205_s23 }
  0x23   : > { %p1208_p5 = pnand %p1206_p2, %p1170_p7 }
  0x24   : > { %p1215_p11 = por %p1214_p10, %p1213_p9 }
  0x25   : > { %p1209_p8 = pneg %p1208_p5 }
  0x26   : > { %1074 = dma.hbm_to_vmem [thread:$0]  (!%p1464_p6), %s1718_s1, 256, %s243_s10, [#allocation6], %s1377_s19, %s1377_s19, %s1378_s20  }
  0x27   : > { %p1216_p12 = pnand %p1215_p11, %p1209_p8 }
  0x29   : > { %1219 = shalt.err (!%p1216_p12)
}
  0x2a   : > { %s1719_s5 = sld [smem:[#allocation18_spill]]  ;;  %s1231_s26 = scalar_lea.vmem %s1470_s17, 1024 }
  0x2b   : > { %p1232_p13 = scmp.ne.s32.totalorder %s1470_s17, %s1231_s26  ;;  %p1239_p5 = scmp.lt.s32.totalorder %s1470_s17, %s1470_s17 }
  0x2c   : > { %p1240_p8 = scmp.lt.s32.totalorder %s1231_s26, %s1231_s26 }
  0x2d   : > { %p1234_p0 = pnand %p1232_p13, %p1170_p7 }
  0x2e   : > { %p1241_p9 = por %p1240_p8, %p1239_p5 }
  0x2f   : > { %p1235_p2 = pneg %p1234_p0 }
  0x30   : > { %1080 = dma.hbm_to_vmem [thread:$0]  (!%p1464_p6), %s1719_s5, 1024, %s1468_s14, [#allocation9], %s1377_s19, %s1377_s19, %s1378_s20  }
  0x31   : > { %p1242_p10 = pnand %p1241_p9, %p1235_p2 }
  0x33   : > { %1245 = shalt.err (!%p1242_p10)
}
  0x34   : > { %s1720_s3 = sld [smem:[#allocation17_spill]]  ;;  %s1379_s13 = smov [#allocation10]  }
  0x35   : > { %s290_s14 = sshll.u32 %s1379_s13, 4  ;;  %s291_s14 = int_to_ptr.vmem [resolvable:$true] %s290_s14 }
  0x36   : > { %s1257_s16 = scalar_lea.vmem %s291_s14, 1024  ;;  %p1265_p0 = scmp.lt.s32.totalorder %s291_s14, %s291_s14 }
  0x37   : > { %p1258_p11 = scmp.ne.s32.totalorder %s291_s14, %s1257_s16  ;;  %p1266_p2 = scmp.lt.s32.totalorder %s1257_s16, %s1257_s16 }
  0x39   : > { %p1260_p12 = pnand %p1258_p11, %p1170_p7  ;;  %p1267_p5 = por %p1266_p2, %p1265_p0 }
  0x3a   : > { %1077 = dma.hbm_to_vmem [thread:$0]  (!%p1464_p6), %s1720_s3, 1024, %s1470_s17, [#allocation6], %s1377_s19, %s1377_s19, %s1378_s20  }
  0x3b   : > { %p1261_p13 = pneg %p1260_p12 }
  0x3d   : > { %p1268_p8 = pnand %p1267_p5, %p1261_p13 }
  0x3f   : > { %1271 = shalt.err (!%p1268_p8)
}
  0x40   : > { %1083 = dma.hbm_to_vmem [thread:$0]  (!%p1464_p6), %s1707_s7, 1024, %s291_s14, [#allocation9], %s1377_s19, %s1377_s19, %s1378_s20  }
  0x41   : > { %s903_s15 = sadd.s32 4294967294, %s1372_s30   ;;  %s1530_s21 = sadd.s32 1, %s1372_s30  }
  0x42   : > { %s30_s22 = ssub.s32 %s1372_s30, %s1530_s21  ;;  %s33_s23 = sadd.s32 1, %s1368_s29 }
  0x43   : > { %p31_p7 = scmp.eq.s32.totalorder %s30_s22, 0  ;;  %p40_p9 = scmp.ne.s32.totalorder %s1368_s29, %s1364_s28 }
  0x44   : > { %p41_p10 = scmp.eq.s32.totalorder %s1372_s30, 0  ;;  %p46_p11 = scmp.ne.s32.totalorder %s1364_s28, %s1360_s27 }
  0x45   : > { %s1541_s24 = scalar_select %p31_p7, %s1368_s29, %s33_s23  }
  0x46   : > { %p1543_p12 = por %p41_p10, %p40_p9  ;;  %p1549_p6 = por %p1709_p1, %p46_p11 }
  0x47   : > { %p217_p13 = scmp.eq.s32.totalorder %s1450_s11, 1  ;;  %p223_p0 = scmp.eq.s32.totalorder %s903_s15, 1 }
  0x48   : > { %s1722_s19 = scalar_select %p1549_p6, 1, 0 }
  0x49   : > { %p1096_p2 = scmp.lt.s32.totalorder %s1372_s30, 2  ;;  %s304_s20 = sand.u32 1, %s1368_s29  }
  0x4a   : > { %p1556_p5 = por %p217_p13, %p40_p9  ;;  %p1560_p8 = por %p223_p0, %p46_p11 }
  0x4b   : > { %s910_s10 = sshll.u32 %s304_s20, 2  ;;  %s911_s13 = sshll.u32 %s1372_s30, 6 }
  0x4c   : > { %s1723_s26 = scalar_select %p1556_p5, 1, 0 }
  0x4d   : > { %s1724_s9 = scalar_select %p1560_p8, 1, 0 }
  0x4e   : > { %s1568_s17 = scalar_lea.hbm %s1700_s0, %s911_s13  ;;  %s308_s18 = scalar_lea.vmem [#allocation2], %s910_s10 }
  0x4f   : > { %s315_s15 = sshll.u32 %s308_s18, 4  ;;  %p1572_p7 = pnand %p1096_p2, %p1543_p12  ;;  %s316_s15 = int_to_ptr.vmem [resolvable:$true] %s315_s15 }
  0x50   : > { %s305_s23 = scalar_lea.sflag [#allocation3], %s304_s20  ;;  %s1272_s1 = scalar_lea.hbm %s1568_s17, 64 }
  0x51   : > { %p1273_p9 = scmp.ne.s32.totalorder %s1568_s17, %s1272_s1  ;;  %p1274_p10 = pneg %p1572_p7 }
  0x52   : > { %s1277_s16 = scalar_lea.hbm %s1700_s0, 128  ;;  %p1278_p0 = scmp.lt.s32.totalorder %s1568_s17, %s1700_s0 }
  0x53   : > { %p1275_p11 = pnand %p1274_p10, %p1273_p9  ;;  %p1279_p12 = scmp.lt.s32.totalorder %s1277_s16, %s1272_s1 }
  0x55   : > { %p1276_p13 = pneg %p1275_p11  ;;  %p1280_p2 = por %p1279_p12, %p1278_p0 }
  0x57   : > { %p1281_p4 = pnand %p1280_p2, %p1276_p13 }
  0x59   : > { %1284 = shalt.err (!%p1281_p4)
}
  0x5a   : > { %s1285_s25 = scalar_lea.vmem %s316_s15, 64  ;;  %s1380_s20 = smov [#allocation2]  }
  0x5b   : > { %p1286_p1 = scmp.ne.s32.totalorder %s316_s15, %s1285_s25  ;;  %s1290_s3 = sshll.u32 %s1380_s20, 4  ;;  %s1291_s3 = int_to_ptr.vmem [resolvable:$false] %s1290_s3 }
  0x5c   : > { %s1292_s5 = scalar_lea.vmem %s1291_s3, 128  ;;  %p1293_p9 = scmp.lt.s32.totalorder %s316_s15, %s1291_s3 }
  0x5d   : > { %p1288_p8 = pnand %p1286_p1, %p1274_p10  ;;  %p1294_p11 = scmp.lt.s32.totalorder %s1292_s5, %s1285_s25 }
  0x5f   : > { %p1289_p5 = pneg %p1288_p8  ;;  %p1295_p6 = por %p1294_p11, %p1293_p9 }
  0x61   : > { %p1296_p3 = pnand %p1295_p6, %p1289_p5 }
  0x63   : > { %1299 = shalt.err (!%p1296_p3)
}
  0x64   : > { %1087 = dma.hbm_to_vmem [thread:$0]  (!%p1572_p7), %s1568_s17, 64, %s316_s15, %s305_s23  }
  0x65   : > { %p1726_p13 = scmp.ne.s32.totalorder %s1716_s12, 0 }
  0x66   : > { %s1593_s1 = sand.u32 (!%p1726_p13), 1, %s1364_s28   ;;  %p1727_p1 = scmp.ne.s32.totalorder (!%p1726_p13), %s1722_s19, 0 }
  0x67   : > { %324 = sbr.rel (%p1726_p13) target bundleno = 929 (0x3a1), region = 52  ;;  %s913_s13 = sshll.u32 (!%p1726_p13), %s1593_s1, 2 }
  0x68   : > { %s327_s14 = scalar_lea.sflag (!%p1726_p13), [#allocation3], %s1593_s1  ;;  %s330_s3 = scalar_lea.vmem (!%p1726_p13), [#allocation2], %s913_s13 }
  0x6c   : > { %1343 = dma.done.wait (%p1727_p1), %s327_s14, 64  }
  0x6d   : > { %1345 = vsyncadd (%p1727_p1), %s327_s14, 4294967232  ;;  %p1728_p3 = scmp.eq.s32.totalorder %s1450_s11, 0 }
  0x6f   : > { %1347 = dma.done.wait (%p1728_p3), [#allocation6], 1280   ;;  %p1729_p4 = pmov %p1728_p3 }
  0x70   : > { %p1730_p6 = pmov %p1728_p3 }
  0x71   : > { %1349 = vsyncadd (%p1729_p4), [#allocation6], 4294966016 }
  0x72   : > { %1351 = dma.done.wait (%p1730_p6), [#allocation9], 2048   ;;  %p1731_p5 = pmov %p1728_p3 }
  0x73   : > { %v1381_v0 = vmov 0.0   ;;  %vm1382_vm0 = vmmov 0   ;;  %v1142_v1 = vld [vmem:[#allocation5 + $0x8] sm:$0xff]   ;;  %v1143_v2 = vld [vmem:[#allocation5] sm:$0xff]   ;;  %vm404_vm1 = vcmask 261120   ;;  %v1146_v6 = vld [vmem:[#allocation7 + $0x28] sm:$0xff]  }
  0x74   : > { %1353 = vsyncadd (%p1731_p5), [#allocation9], 4294965248  ;;  %983 = vmatprep.subr.bf16.mxu0 %v1381_v0  ;;  %987 = vmatprep.mubr.msk.bf16.mxu0 %vm1382_vm0, %v1381_v0  ;;  %v1144_v3 = vld [vmem:[#allocation7 + $0x38] sm:$0xff]   ;;  %v1145_v4 = vld [vmem:[#allocation7 + $0x30] sm:$0xff]   ;;  %s918_s23 = sshll.u32 %s1593_s1, 3  ;;  %s950_s16 = sshll.u32 %s1450_s11, 7 }
  0x75   : > { %991 = vmatprep.subr.bf16.mxu1 %v1381_v0  ;;  %1007 = vmatprep.mubr.msk.bf16.mxu1 %vm1382_vm0, %v1381_v0  ;;  %v380_v5 = vld [vmem:[%s330_s3] sm:$0xf]  ;;  %v1147_v7 = vld [vmem:[#allocation7 + $0x20] sm:$0xff]   ;;  %v1148_v8 = vld [vmem:[#allocation7 + $0x18] sm:$0xff]   ;;  %s378_s10 = scalar_lea.vmem [#allocation11], %s918_s23  ;;  %s1657_s13 = scalar_lea.hbm %s1708_s8, %s950_s16 }
  0x76   : > { %984 = vmatpush3.bf16.msra.mxu0 %v1142_v1  ;;  %992 = vmatpush3.bf16.msra.mxu1 %v1144_v3  ;;  %v1149_v9 = vld [vmem:[#allocation7 + $0x10] sm:$0xff]   ;;  %v1150_v10 = vld [vmem:[#allocation7 + $0x8] sm:$0xff]   ;;  %v1151_v11 = vld [vmem:[#allocation7] sm:$0xff]   ;;  %s795_s18 = sshll.u32 %s378_s10, 4  ;;  %s782_s14 = scalar_lea.sflag [#allocation4], %s1593_s1  ;;  %s1659_s18 = int_to_ptr.vmem [resolvable:$true] %s795_s18 }
  0x77   : > { %985 = vmatprep.subr.bf16.mxu0 %v1381_v0  ;;  %993 = vmatprep.subr.bf16.mxu1 %v1381_v0  ;;  %v1152_v12 = vld [vmem:[#allocation8 + $0x38] sm:$0xff]   ;;  %v1153_v13 = vld [vmem:[#allocation8 + $0x30] sm:$0xff]   ;;  %v1154_v14 = vld [vmem:[#allocation8 + $0x28] sm:$0xff]   ;;  %s1300_s3 = scalar_lea.vmem %s1659_s18, 128  ;;  %p1732_p7 = scmp.ne.s32.totalorder %s1723_s26, 0 }
  0x78   : > { %v1155_v15 = vld [vmem:[#allocation8 + $0x20] sm:$0xff]   ;;  %v1156_v16 = vld [vmem:[#allocation8 + $0x18] sm:$0xff]   ;;  %v1157_v17 = vld [vmem:[#allocation8 + $0x10] sm:$0xff]   ;;  %p1301_p8 = scmp.ne.s32.totalorder %s1659_s18, %s1300_s3  ;;  %s1383_s11 = smov [#allocation11]  }
  0x79   : > { %v1158_v18 = vld [vmem:[#allocation8 + $0x8] sm:$0xff]   ;;  %v1159_v27 = vld [vmem:[#allocation8] sm:$0xff]   ;;  %v1160_v28 = vld [vmem:[#allocation10 + $0x38] sm:$0xff]   ;;  %s1304_s5 = sshll.u32 %s1383_s11, 4  ;;  %s1305_s5 = int_to_ptr.vmem [resolvable:$false] %s1304_s5 }
  0x7a   : > { %986 = vmatpush3.bf16.msra.mxu0 %v1143_v2  ;;  %994 = vmatpush3.bf16.msra.mxu1 %v1145_v4  ;;  %v919_v19 = vld [vmem:[%s1702_s2] ss:$0 sm:$0xff]  ;;  %v1161_v29 = vld [vmem:[#allocation10 + $0x30] sm:$0xff]   ;;  %v1163_v31 = vld [vmem:[#allocation10 + $0x20] sm:$0xff]   ;;  %p1302_p10 = pnand %p1301_p8, %p1732_p7  ;;  %s1306_s12 = scalar_lea.vmem %s1305_s5, 256 }
  0x7b   : > { %1011 = vmatprep.subr.bf16.mxu0 %v1381_v0  ;;  %995 = vmatprep.subr.bf16.mxu1 %v1381_v0  ;;  %v1162_v30 = vld [vmem:[#allocation10 + $0x28] sm:$0xff]   ;;  %v1164_v32 = vld [vmem:[#allocation10 + $0x18] sm:$0xff]   ;;  %v1165_v33 = vld [vmem:[#allocation10 + $0x10] sm:$0xff]   ;;  %p1307_p12 = scmp.lt.s32.totalorder %s1659_s18, %s1305_s5  ;;  %p1308_p2 = scmp.lt.s32.totalorder %s1306_s12, %s1300_s3 }
  0x7c   : > { %v923_v34 = vld [vmem:[%s1704_s4] ss:$0 sm:$0xff]  ;;  %v1167_v42 = vld [vmem:[#allocation10] sm:$0xff]   ;;  %p1303_p0 = pneg %p1302_p10 }
  0x7d   : > { %988 = vmatmul.mubr.msk.bf16.vlgmr.msra.gmra.mxu0 %vm404_vm1, %v380_v5  ;;  %v1166_v41 = vld [vmem:[#allocation10 + $0x8] sm:$0xff]   ;;  %p1309_p9 = por %p1308_p2, %p1307_p12 }
  0x7e   : > { %1027 = vmatprep.mubr.msk.bf16.mxu0 %vm1382_vm0, %v1381_v0  ;;  %996 = vmatpush3.bf16.msra.mxu1 %v1146_v6  ;;  %v932_v43 = vld [vmem:[%s1706_s6] ss:$0 sm:$0xff] }
  0x7f   : > { %997 = vmatprep.subr.bf16.mxu1 %v1381_v0  ;;  %1012 = vmatpush3.bf16.msra.mxu0 %v1152_v12  ;;  %p1310_p11 = pnand %p1309_p9, %p1303_p0 }
  0x80   : > { %1013 = vmatprep.subr.bf16.mxu0 %v1381_v0 }
  0x82   : > { %998 = vmatpush3.bf16.msra.mxu1 %v1147_v7 }
  0x83   : > { %999 = vmatprep.subr.bf16.mxu1 %v1381_v0  ;;  %1014 = vmatpush3.bf16.msra.mxu0 %v1153_v13 }
  0x84   : > { %1015 = vmatprep.subr.bf16.mxu0 %v1381_v0 }
  0x86   : > { %1000 = vmatpush3.bf16.msra.mxu1 %v1148_v8 }
  0x87   : > { %1001 = vmatprep.subr.bf16.mxu1 %v1381_v0  ;;  %1016 = vmatpush3.bf16.msra.mxu0 %v1154_v14 }
  0x88   : > { %1017 = vmatprep.subr.bf16.mxu0 %v1381_v0 }
  0x8a   : > { %1002 = vmatpush3.bf16.msra.mxu1 %v1149_v9 }
  0x8b   : > { %1003 = vmatprep.subr.bf16.mxu1 %v1381_v0  ;;  %1018 = vmatpush3.bf16.msra.mxu0 %v1155_v15 }
  0x8c   : > { %1019 = vmatprep.subr.bf16.mxu0 %v1381_v0 }
  0x8e   : > { %1004 = vmatpush3.bf16.msra.mxu1 %v1150_v10 }
  0x8f   : > { %1005 = vmatprep.subr.bf16.mxu1 %v1381_v0  ;;  %1020 = vmatpush3.bf16.msra.mxu0 %v1156_v16 }
  0x90   : > { %1021 = vmatprep.subr.bf16.mxu0 %v1381_v0 }
  0x92   : > { %1006 = vmatpush3.bf16.msra.mxu1 %v1151_v11 }
  0x93   : > { %1031 = vmatprep.subr.bf16.mxu1 %v1381_v0  ;;  %1022 = vmatpush3.bf16.msra.mxu0 %v1157_v17 }
  0x94   : > { %1023 = vmatprep.subr.bf16.mxu0 %v1381_v0 }
  0x97   : > { %1024 = vmatpush3.bf16.msra.mxu0 %v1158_v18 }
  0x98   : > { %1025 = vmatprep.subr.bf16.mxu0 %v1381_v0 }
  0x9b   : > { %1026 = vmatpush3.bf16.msra.mxu0 %v1159_v27 }
 0x13d   : > { %v442_v20 = vpop.f32.mrf.mxu0 }
 0x13e   : > { %v443_v21 = vadd.f32 %v919_v19, %v442_v20 }
 0x13f   : > { %v989_v22 = vpop.f32.mrf.mxu0 }
 0x140   : > { %v448_v23 = vmax.f32 %v443_v21, 0.0 }
 0x141   : > { %v445_v24 = vpop.f32.mrf.mxu0 }
 0x142   : > { %v449_v25 = vpack.c.bf16 %v448_v23, %v448_v23 }
 0x143   : > { %v990_v26 = vpop.f32.mrf.mxu0 }
 0x144   : > { %1008 = vmatmul.mubr.bf16.vlgmr.msra.gmra.mxu1 %v449_v25 }
 0x145   : > { %1047 = vmatprep.mubr.msk.bf16.mxu1 %vm1382_vm0, %v1381_v0  ;;  %1032 = vmatpush3.bf16.msra.mxu1 %v1160_v28 }
 0x146   : > { %1033 = vmatprep.subr.bf16.mxu1 %v1381_v0 }
 0x149   : > { %1034 = vmatpush3.bf16.msra.mxu1 %v1161_v29 }
 0x14a   : > { %1035 = vmatprep.subr.bf16.mxu1 %v1381_v0 }
 0x14d   : > { %1036 = vmatpush3.bf16.msra.mxu1 %v1162_v30 }
 0x14e   : > { %1037 = vmatprep.subr.bf16.mxu1 %v1381_v0 }
 0x151   : > { %1038 = vmatpush3.bf16.msra.mxu1 %v1163_v31 }
 0x152   : > { %1039 = vmatprep.subr.bf16.mxu1 %v1381_v0 }
 0x155   : > { %1040 = vmatpush3.bf16.msra.mxu1 %v1164_v32 }
 0x156   : > { %1041 = vmatprep.subr.bf16.mxu1 %v1381_v0 }
 0x159   : > { %1042 = vmatpush3.bf16.msra.mxu1 %v1165_v33 }
 0x15a   : > { %1043 = vmatprep.subr.bf16.mxu1 %v1381_v0 }
 0x15d   : > { %1044 = vmatpush3.bf16.msra.mxu1 %v1166_v41 }
 0x15e   : > { %1045 = vmatprep.subr.bf16.mxu1 %v1381_v0 }
 0x161   : > { %1046 = vmatpush3.bf16.msra.mxu1 %v1167_v42 }
 0x204   : > { %v555_v35 = vpop.f32.mrf.mxu1 }
 0x205   : > { %v556_v36 = vadd.f32 %v923_v34, %v555_v35 }
 0x206   : > { %v1009_v37 = vpop.f32.mrf.mxu1 }
 0x207   : > { %v561_v38 = vpack.c.bf16 %v556_v36, %v556_v36 }
 0x208   : > { %v558_v39 = vpop.f32.mrf.mxu1 }
 0x209   : > { %1028 = vmatmul.mubr.bf16.vlgmr.msra.gmra.mxu0 %v561_v38 }
 0x20a   : > { %v1010_v40 = vpop.f32.mrf.mxu1 }
 0x2c9   : > { %v667_v44 = vpop.f32.mrf.mxu0 }
 0x2ca   : > { %v668_v45 = vadd.f32 %v932_v43, %v667_v44 }
 0x2cb   : > { %v1029_v46 = vpop.f32.mrf.mxu0 }
 0x2cc   : > { %v673_v47 = vmax.f32 %v668_v45, 0.0 }
 0x2cd   : > { %v670_v48 = vpop.f32.mrf.mxu0 }
 0x2ce   : > { %v674_v49 = vpack.c.bf16 %v673_v47, %v673_v47 }
 0x2cf   : > { %v1030_v50 = vpop.f32.mrf.mxu0 }
 0x2d0   : > { %1048 = vmatmul.mubr.bf16.vlgmr.msra.gmra.mxu1 %v674_v49 }
 0x390   : > { %v773_v51 = vpop.f32.mrf.mxu1 }
 0x391   : > { %v779_v52 = vadd.f32 %v773_v51, %v556_v36 }
 0x392   : > { %v1049_v53 = vpop.f32.mrf.mxu1 }
 0x393   : > { %780 = vst [vmem:[%s378_s10] sm:$0xff] %v779_v52 }
 0x394   : > { %v776_v54 = vpop.f32.mrf.mxu1 }
 0x395   : > { %1313 = shalt.err (!%p1310_p11)
}
 0x396   : > { %s1314_s19 = scalar_lea.hbm %s1657_s13, 128  ;;  %s1318_s15 = scalar_lea.hbm %s1708_s8, 256 }
 0x397   : > { %p1315_p13 = scmp.ne.s32.totalorder %s1657_s13, %s1314_s19  ;;  %p1319_p4 = scmp.lt.s32.totalorder %s1657_s13, %s1708_s8 }
 0x398   : > { %p1320_p6 = scmp.lt.s32.totalorder %s1318_s15, %s1314_s19 }
 0x399   : > { %p1316_p1 = pnand %p1315_p13, %p1732_p7 }
 0x39a   : > { %p1321_p5 = por %p1320_p6, %p1319_p4 }
 0x39b   : > { %p1317_p3 = pneg %p1316_p1 }
 0x39d   : > { %p1322_p8 = pnand %p1321_p5, %p1317_p3 }
 0x39f   : > { %1325 = shalt.err (!%p1322_p8)
}
 0x3a0   : > { %1069 = dma.vmem_to_hbm [thread:$0]  (%p1732_p7), %s1659_s18, 128, %s1657_s13, %s782_s14   ;;  %v1050_v55 = vpop.f32.mrf.mxu1 }
 0x3a1 PF: > { %s807_s16 = sand.u32 1, %s1360_s27   ;;  %p1733_p10 = scmp.ne.s32.totalorder %s1724_s9, 0 }
 0x3a2   : > { %p1734_p0 = scmp.ge.s32.totalorder %s1372_s30, 2  ;;  %s808_s10 = scalar_lea.sflag [#allocation4], %s807_s16 }
 0x3a4   : > { %p1089_p12 = pnand %p1734_p0, %p1733_p10 }
 0x3a6   : > { %p1090_p2 = pneg %p1089_p12 }
 0x3a8   : > { %1355 = dma.done.wait (%p1090_p2), %s808_s10, 128  }
 0x3a9   : > { %1357 = vsyncadd (%p1090_p2), %s808_s10, 4294967168  ;;  %p23_p9 = scmp.ge.s32.totalorder %s1530_s21, 4   ;;  %s1735_s27 = smov %s1364_s28 }
 0x3aa   : > { %s1736_s28 = smov %s1368_s29  ;;  %s1737_s29 = smov %s1541_s24 }
 0x3ab   : > { %s1738_s30 = smov %s1530_s21  ;;  %25 = sbr.rel (!%p23_p9) target bundleno = 11 (0xb), region = 113 }
 0x3b0   :  { %813 = vsyncpa [#allocation3], 1 }
 0x3b1   :  { %815 = vsyncpa [#allocation3 + $0x1], 1 }
 0x3b2   :  { %816 = vsyncpa [#allocation6], 1 }
 0x3b3   :  { %817 = vsyncpa [#allocation9], 1 }
 0x3b4   :  { %818 = vsyncpa [#allocation4], 1 }
 0x3b5   :  { %820 = vsyncpa [#allocation4 + $0x1], 1 }

</bundles_post_ra>
